<compile_context>
chip_gen: v7x
topology: tpu7x:2x2x1
jax: 0.10.0
libtpu: 0.0.40
codegen_flags: <defaults>
</compile_context>

<pallas_src>
import jax
import jax.numpy as jnp
from jax import lax
from jax.experimental import pallas as pl
from jax.experimental.pallas import tpu as pltpu


# ------------------------------ Pallas kernels -------------------------------

def _make_fixed_kernel(tl, resident):
    # resident: table ref holds the whole (L_rows, D_eff) table in VMEM and is
    # sliced per seq-tile inside the kernel; otherwise it is already the tile.
    def kernel(x_ref, tbl_ref, o_ref):
        if resident:
            start = pl.multiple_of(pl.program_id(0) * tl, 8)
            emb = tbl_ref[pl.ds(start, tl), :]
        else:
            emb = tbl_ref[...]
        x = x_ref[...].astype(jnp.float32)
        o_ref[...] = (x + emb.astype(jnp.float32)).astype(o_ref.dtype)
    return kernel


def _make_rope_kernel(tl, d_eff, resident):
    # o = x*cos + rotate_every_two(x)*sin, with the sign of rotate_every_two folded
    # into the sin table.  Table layout: (rows, 2*d_eff) = [cos | signed sin].
    # Pair swap = two XLU rolls + parity select; wrapped roll lanes are never
    # selected (lane 0 is even -> x_next, last lane is odd -> x_prev), so this is
    # also correct across chunk boundaries after the lane-dense repack.
    def kernel(x_ref, tbl_ref, o_ref):
        if resident:
            start = pl.multiple_of(pl.program_id(0) * tl, 8)
            t = tbl_ref[pl.ds(start, tl), :].astype(jnp.float32)
        else:
            t = tbl_ref[...].astype(jnp.float32)
        cos = t[:, :d_eff]
        sin_signed = t[:, d_eff:]                    # -sin on even lanes, +sin on odd
        x = x_ref[...].astype(jnp.float32)
        x_next = pltpu.roll(x, d_eff - 1, axis=1)    # x_next[i] = x[(i + 1) % d]
        x_prev = pltpu.roll(x, 1, axis=1)            # x_prev[i] = x[(i - 1) % d]
        odd = (lax.broadcasted_iota(jnp.int32, x.shape, 1) & 1) == 1
        rot = jnp.where(odd, x_prev, x_next)         # |rotate_every_two(x)|
        o_ref[...] = (x * cos + rot * sin_signed).astype(o_ref.dtype)
    return kernel


# ------------------------------ Tiling helpers --------------------------------

def _vmem_budget_bytes():
    try:
        cap = int(pltpu.get_tpu_info().vmem_capacity_bytes)
    except Exception:
        cap = 64 * 1024 * 1024          # conservative (v7x-sized) fallback
    return min((cap * 3) // 4, 64 * 1024 * 1024)   # 48 MiB v7x, 64 MiB v5e/v6e


def _sublane_pack(itemsize):
    # native sublane packing: 8 rows for 4-byte, 16 for 2-byte, 32 for 1-byte dtypes
    return max(8, 32 // max(1, itemsize))


def _choose_seq_tile(l_rows, max_rows, pack):
    if max_rows >= l_rows:
        return l_rows
    rows = max(pack, (max_rows // pack) * pack)
    if rows >= l_rows:
        return l_rows
    # prefer a divisor of l_rows: no ragged last tile, enables resident-table slicing
    r = rows
    while r >= pack:
        if l_rows % r == 0:
            return r
        r -= pack
    return rows


# ------------------------------ Module wrapper ---------------------------------

class FixedAbsolutePositionEmbedding:
    def __init__(self, max_position_embeddings, hidden_size, position_embedding_type):
        assert hidden_size % 2 == 0, "hidden_size must be even"
        self.max_position_embeddings = max_position_embeddings
        self.hidden_size = hidden_size
        self.position_embedding_type = position_embedding_type
        self.is_absolute = True
        self._debug_force_tile_rows = None   # test hook: force multi-tile grid

        inv_freq = 1.0 / (10000.0 ** (
            jnp.arange(0, hidden_size, 2, dtype=jnp.float32) / hidden_size))
        position = jnp.arange(max_position_embeddings, dtype=jnp.float32)
        sinusoid_inp = jnp.einsum('i,j->ij', position, inv_freq)         # (P, D/2)
        # (P, D): [sin | cos] -- same buffer layout as the PyTorch module.
        self.embeddings = jnp.concatenate(
            [jnp.sin(sinusoid_inp), jnp.cos(sinusoid_inp)], axis=-1)

        if position_embedding_type == 'rope':
            half = hidden_size // 2
            # '... d -> ... (d 2)' repeats + sign fold, done ONCE here.
            sin_rep = jnp.repeat(self.embeddings[:, :half], 2, axis=-1)   # (P, D)
            cos_rep = jnp.repeat(self.embeddings[:, half:], 2, axis=-1)   # (P, D)
            sign = jnp.where((jnp.arange(hidden_size) % 2) == 0, -1.0, 1.0
                             ).astype(jnp.float32)
            self._cos_plane = cos_rep
            self._sin_plane = sin_rep * sign    # -sin even lanes, +sin odd lanes
        self._table_cache = {}                  # keyed on (L, lane-dense factor)

    # Tables are kept in f32 (precision; traffic is negligible vs activations).
    def _get_table(self, L, f):
        key = (L, f)
        tbl = self._table_cache.get(key)
        if tbl is None:
            D = self.hidden_size
            rows, d_eff = L // f, D * f
            if self.position_embedding_type == 'fixed':
                tbl = self.embeddings[:L].reshape(rows, d_eff)
            elif self.position_embedding_type == 'rope':
                cos = self._cos_plane[:L].reshape(rows, d_eff)
                sin = self._sin_plane[:L].reshape(rows, d_eff)
                tbl = jnp.concatenate([cos, sin], axis=-1)     # (rows, 2*d_eff)
            else:
                raise ValueError(self.position_embedding_type)
            self._table_cache[key] = tbl
        return tbl

    def _forward3d(self, x, donate=False):
        N, L, D = x.shape
        assert D == self.hidden_size, "last dim of x must equal hidden_size"
        assert L <= self.max_position_embeddings, \
            "sequence length exceeds max_position_embeddings"

        # Lane-dense repack: pure row-major reshape, no data movement.
        f = 1
        if D < 128 and 128 % D == 0 and (L * D) % 128 == 0:
            f = 128 // D
        d_eff, l_rows = D * f, L // f
        x_w = x.reshape(N, l_rows, d_eff) if f > 1 else x

        itemsize = jnp.dtype(x.dtype).itemsize
        pack = _sublane_pack(itemsize)
        budget = _vmem_budget_bytes()

        tbl = self._get_table(L, f)                 # f32
        tbl_width = tbl.shape[-1]
        tbl_bytes = tbl.size * 4

        # Double-buffered footprint per seq row: x + out tiles + (blocked) table tile.
        row_cost = 4 * d_eff * itemsize + 2 * tbl_width * 4
        max_rows_vmem = max(pack, (budget * 3 // 4) // row_cost)
        max_rows_blk = max(pack, (16 * 1024 * 1024) // (d_eff * itemsize))
        tl = _choose_seq_tile(l_rows, min(max_rows_vmem, max_rows_blk), pack)
        if self._debug_force_tile_rows is not None:
            tl = min(l_rows, self._debug_force_tile_rows)
        num_l = pl.cdiv(l_rows, tl)
        grid = (num_l, N)     # batch innermost -> table tile reused across the batch

        xblk_bytes = tl * d_eff * itemsize
        # VMEM-resident table: single DMA, frees the per-tile double buffer.
        resident = (num_l > 1 and l_rows % tl == 0
                    and 4 * xblk_bytes + 2 * tbl_bytes <= (budget * 3) // 4)

        x_spec = pl.BlockSpec((pl.Squeezed(), tl, d_eff), lambda lt, n: (n, lt, 0))
        if resident:
            tbl_spec = pl.BlockSpec(tbl.shape, lambda lt, n: (0, 0))
        else:
            tbl_spec = pl.BlockSpec((tl, tbl_width), lambda lt, n: (lt, 0))

        if self.position_embedding_type == 'fixed':
            kernel = _make_fixed_kernel(tl, resident)
            flops = int(x.size)
        elif self.position_embedding_type == 'rope':
            kernel = _make_rope_kernel(tl, d_eff, resident)
            flops = 4 * int(x.size)
        else:
            raise ValueError(self.position_embedding_type)

        cost = pl.CostEstimate(
            flops=flops, transcendentals=0,
            bytes_accessed=2 * int(x.size) * itemsize + tbl_bytes)

        semantics = ("parallel", "arbitrary") if num_l > 1 else ("parallel", "parallel")
        cp = pltpu.CompilerParams(dimension_semantics=semantics,
                                  vmem_limit_bytes=budget)

        out = pl.pallas_call(
            kernel,
            out_shape=jax.ShapeDtypeStruct(x_w.shape, x.dtype),
            grid=grid,
            in_specs=[x_spec, tbl_spec],
            out_specs=x_spec,
            compiler_params=cp,
            cost_estimate=cost,
            input_output_aliases=({0: 0} if donate else {}),
        )(x_w, tbl)
        return out.reshape(N, L, D) if f > 1 else out

    def __call__(self, x, donate=False):
        if x.ndim == 3:
            return self._forward3d(x, donate=donate)
        elif x.ndim == 4:
            b, h, l, d = x.shape
            y = self._forward3d(x.reshape(b * h, l, d), donate=donate)
            return y.reshape(b, h, l, d)
        else:
            raise ValueError("expected 3D or 4D input")


# ----------------------------- Pure-JAX reference ------------------------------

def _ref_rotate_every_two(x):
    x1 = x[..., 0::2]
    x2 = x[..., 1::2]
    return jnp.stack((-x2, x1), axis=-1).reshape(x.shape)


def ref_forward(x, embeddings, ptype):
    orig_shape = x.shape
    if x.ndim == 4:
        b, h, l, d = x.shape
        x = x.reshape(b * h, l, d)
    L, D = x.shape[1], x.shape[2]
    emb = embeddings[None, :L, :]
    if ptype == 'fixed':
        y = x + emb
    else:
        sin = jnp.repeat(emb[..., :D // 2], 2, axis=-1)
        cos = jnp.repeat(emb[..., D // 2:], 2, axis=-1)
        y = x * cos + _ref_rotate_every_two(x) * sin
    return y.reshape(orig_shape)


# ------------------------------------ Main -------------------------------------

if __name__ == "__main__":
    key = jax.random.PRNGKey(0)
    k1, k2, k3 = jax.random.split(key, 3)

    # Case A: head_dim 64 -> lane-dense repack path (128 % 64 == 0).
    B, H, L, Dh, P = 2, 2, 16, 64, 64
    x4 = jax.random.normal(k1, (B, H, L, Dh), dtype=jnp.float32)       # (b, h, l, d)
    x3_small = jax.random.normal(k2, (B, L, Dh), dtype=jnp.float32)    # (b, l, d)
    # Case B: hidden 128 -> native lane width (no repack).
    D2, L2, P2 = 128, 16, 32
    x3_big = jax.random.normal(k3, (B, L2, D2), dtype=jnp.float32)

    for ptype in ('fixed', 'rope'):
        mod64 = FixedAbsolutePositionEmbedding(P, Dh, ptype)
        mod128 = FixedAbsolutePositionEmbedding(P2, D2, ptype)

        # float32: tight check against the pure-JAX reference.
        for mod, x in ((mod64, x4), (mod64, x3_small), (mod128, x3_big)):
            y = mod(x)
            jax.block_until_ready(y)
            y_ref = ref_forward(x, mod.embeddings, ptype)
            assert y.shape == x.shape and y.dtype == x.dtype
            assert jnp.allclose(y, y_ref, atol=1e-5, rtol=1e-5), \
                f"mismatch for {ptype}, shape {x.shape}"

        # Multi-tile grid + VMEM-resident table path (forced small seq tile).
        mod128._debug_force_tile_rows = 8
        y = mod128(x3_big)
        jax.block_until_ready(y)
        y_ref = ref_forward(x3_big, mod128.embeddings, ptype)
        assert jnp.allclose(y, y_ref, atol=1e-5, rtol=1e-5), \
            f"mismatch for {ptype} resident-table path"
        mod128._debug_force_tile_rows = None

        # bfloat16 activations (tables stay f32); loose check vs f32 reference.
        xb = x3_big.astype(jnp.bfloat16)
        yb = mod128(xb)
        jax.block_until_ready(yb)
        yb_ref = ref_forward(x3_big, mod128.embeddings, ptype)
        assert yb.shape == xb.shape and yb.dtype == jnp.bfloat16
        assert jnp.allclose(yb.astype(jnp.float32), yb_ref, atol=5e-2, rtol=5e-2), \
            f"bf16 mismatch for {ptype}"

    print("KERNEL_OK")
</pallas_src>

<mosaic_0001>
module attributes {stable_mosaic.version = 11 : i64} {
  func.func @kernel(%arg0: i32, %arg1: i32, %arg2: memref<1x8x128xf32, #tpu.memory_space<vmem>>, %arg3: memref<8x128xf32, #tpu.memory_space<vmem>>, %arg4: memref<1x8x128xf32, #tpu.memory_space<vmem>>) attributes {dimension_semantics = [#tpu.dimension_semantics<parallel>, #tpu.dimension_semantics<parallel>], iteration_bounds = array<i64: 1, 4>, scalar_prefetch = 0 : i64, scratch_operands = 0 : i64, tpu.core_type = #tpu.core_type<tc>, window_params = [{transform_indices = @transform_0, window_bounds = array<i64: 1, 8, 128>}, {transform_indices = @transform_1, window_bounds = array<i64: 8, 128>}, {transform_indices = @transform_2, window_bounds = array<i64: 1, 8, 128>}]} {
    %c0 = arith.constant 0 : index
    %c0_0 = arith.constant 0 : index
    %0 = vector.load %arg3[%c0, %c0_0] : memref<8x128xf32, #tpu.memory_space<vmem>>, vector<8x128xf32>
    %c0_1 = arith.constant 0 : index
    %c0_2 = arith.constant 0 : index
    %c0_3 = arith.constant 0 : index
    %1 = vector.load %arg2[%c0_1, %c0_2, %c0_3] : memref<1x8x128xf32, #tpu.memory_space<vmem>>, vector<1x8x128xf32>
    %2 = vector.shape_cast %1 : vector<1x8x128xf32> to vector<8x128xf32>
    %3 = arith.addf %2, %0 : vector<8x128xf32>
    %c0_4 = arith.constant 0 : index
    %c0_5 = arith.constant 0 : index
    %c0_6 = arith.constant 0 : index
    %4 = vector.load %arg4[%c0_4, %c0_5, %c0_6] : memref<1x8x128xf32, #tpu.memory_space<vmem>>, vector<1x8x128xf32>
    %5 = vector.shape_cast %4 : vector<1x8x128xf32> to vector<8x128xf32>
    %6 = vector.shape_cast %3 : vector<8x128xf32> to vector<1x8x128xf32>
    tpu.vector_store %arg4[%c0_4, %c0_5, %c0_6], %6 {strides = array<i32>} : memref<1x8x128xf32, #tpu.memory_space<vmem>>, vector<1x8x128xf32>,
    return
  }
  func.func @transform_0(%arg0: i32, %arg1: i32) -> (i32, i32, i32) {
    %c0_i32 = arith.constant 0 : i32
    %c0_i32_0 = arith.constant 0 : i32
    return %arg1, %arg0, %c0_i32 : i32, i32, i32
  }
  func.func @transform_1(%arg0: i32, %arg1: i32) -> (i32, i32) {
    %c0_i32 = arith.constant 0 : i32
    %c0_i32_0 = arith.constant 0 : i32
    return %arg0, %c0_i32 : i32, i32
  }
  func.func @transform_2(%arg0: i32, %arg1: i32) -> (i32, i32, i32) {
    %c0_i32 = arith.constant 0 : i32
    %c0_i32_0 = arith.constant 0 : i32
    return %arg1, %arg0, %c0_i32 : i32, i32, i32
  }
}

</mosaic_0001>

<bundles_post_ra>
// kernel: tpu_custom_call.1
= control target key start
LH: loop header
LB: loop body
LE: loop exit
PB: predicated region body
PF: predicated region fallthrough
CT: control target
= control target key end

     0   :  { %7 = vsyncpa [#allocation3], 0  ;;  %s773_s0 = inlined_call_operand.hbm [shape: f32[4,8,128], index: 0, kind: input, shape index: {}]   ;;  %s774_s1 = inlined_call_operand.hbm [shape: f32[8,128], index: 1, kind: input, shape index: {}]   ;;  %s775_s2 = inlined_call_operand.hbm [shape: f32[4,8,128], index: 2, kind: output, shape index: {}]  }
   0x1   :  { %9 = vsyncpa [#allocation3 + $0x1], 0 }
   0x2   :  { %10 = vsyncpa [#allocation6], 0 }
   0x3   :  { %11 = vsyncpa [#allocation4], 0 }
   0x4   :  { %13 = vsyncpa [#allocation4 + $0x1], 0  ;;  %s559_s9 = smov 0   ;;  %s561_s10 = smov 0  }
   0x5   :  { %s563_s11 = smov 0   ;;  %s565_s12 = smov 0  }
   0x6   :  { %s567_s13 = smov 0   ;;  %s569_s14 = smov 0  }
   0x7 LB: > { %s307_s15 = sadd.s32 4294967295, %s539_s14   ;;  %s308_s16 = sadd.s32 4294967294, %s539_s14   ;;  %s539_s14 = sphi %s569_s14, %s19_s14   ;;  %s535_s13 = sphi %s567_s13, %s799_s13   ;;  %s531_s12 = sphi %s565_s12, %s798_s12   ;;  %s527_s11 = sphi %s563_s11, %s797_s11   ;;  %s523_s10 = sphi %s561_s10, %s796_s10   ;;  %s519_s9 = sphi %s559_s9, %s795_s9  }
   0x8   : > { %p53_p0 = scmp.ne.s32.totalorder %s523_s10, %s519_s9  ;;  %p593_p1 = scmp.eq.s32.totalorder %s307_s15, 0 }
   0x9   : > { %p597_p2 = scmp.eq.s32.totalorder %s307_s15, 3  ;;  %p111_p3 = scmp.eq.s32.totalorder %s308_s16, 3 }
   0xa   : > { %s780_s17 = scalar_select %p593_p1, 1, 0 }
   0xb   : > { %s781_s18 = scalar_select %p597_p2, 1, 0 }
   0xc   : > { %p603_p4 = por %p593_p1, %p53_p0  ;;  %p309_p5 = scmp.ge.s32.totalorder %s539_s14, 1 }
   0xd   : > { %p608_p6 = por %p111_p3, %p53_p0  ;;  %p118_p7 = scmp.lt.s32.totalorder %s539_s14, 5 }
   0xe   : > { %s782_s19 = scalar_select %p603_p4, 1, 0 }
   0xf   : > { %s783_s20 = scalar_select %p608_p6, 1, 0 }
  0x10   : > { %p613_p8 = pnand %p309_p5, %p118_p7  ;;  %s541_s22 = smov [#allocation5]  }
  0x11   : > { %s133_s23 = sshll.u32 %s541_s22, 4  ;;  %s28_s25 = sadd.s32 1, %s535_s13  ;;  %s134_s23 = int_to_ptr.vmem [resolvable:$true] %s133_s23 }
  0x12   : > { %s784_s21 = scalar_select %p613_p8, 1, 0 }
  0x13   : > { %p330_p9 = pneg %p613_p8  ;;  %s40_s26 = sadd.s32 1, %s527_s11 }
  0x14   : > { %p627_p11 = scmp.ge.s32.totalorder %s28_s25, 4  ;;  %s395_s30 = scalar_lea.hbm %s774_s1, 128 }
  0x15   : > { %p621_p10 = pnand %p330_p9, %p593_p1  ;;  %p396_p12 = scmp.ne.s32.totalorder %s774_s1, %s395_s30 }
  0x16   : > { %s786_s27 = scalar_select %p627_p11, 1, 0 }
  0x17   : > { %p397_p13 = pneg %p621_p10  ;;  %p402_p5 = scmp.lt.u32.totalorder %s395_s30, %s774_s1 }
  0x19   : > { %p398_p0 = pnand %p397_p13, %p396_p12 }
  0x1b   : > { %p399_p3 = pneg %p398_p0 }
  0x1d   : > { %p404_p7 = pnand %p402_p5, %p399_p3 }
  0x1f   : > { %407 = shalt.err (!%p404_p7)
}
  0x20   : > { %s408_s7 = scalar_lea.vmem %s134_s23, 128  ;;  %p416_p4 = scmp.lt.s32.totalorder %s134_s23, %s134_s23 }
  0x21   : > { %p409_p9 = scmp.ne.s32.totalorder %s134_s23, %s408_s7  ;;  %p417_p8 = scmp.lt.s32.totalorder %s408_s7, %s408_s7 }
  0x23   : > { %p411_p6 = pnand %p409_p9, %p397_p13  ;;  %p418_p2 = por %p417_p8, %p416_p4 }
  0x25   : > { %p412_p1 = pneg %p411_p6 }
  0x27   : > { %p419_p11 = pnand %p418_p2, %p412_p1 }
  0x29   : > { %422 = shalt.err (!%p419_p11)
}
  0x2a   : > { %333 = dma.hbm_to_vmem [thread:$0]  (!%p621_p10), %s774_s1, 128, %s134_s23, [#allocation6]  }
  0x2b   : > { %p787_p4 = scmp.ne.s32.totalorder %s786_s27, 0  ;;  %p47_p1 = scmp.ne.s32.totalorder %s527_s11, %s523_s10 }
  0x2c   : > { %p48_p2 = scmp.eq.s32.totalorder %s539_s14, 0  ;;  %p343_p6 = scmp.lt.s32.totalorder %s539_s14, 4 }
  0x2d   : > { %s801_s25 = smov (%p787_p4, %s28_s25), 0  ;;  %p788_p12 = scmp.ne.s32.totalorder %s781_s18, 0 }
  0x2e   : > { %s35_s16 = ssub.s32 %s535_s13, %s801_s25  ;;  %p49_p11 = por %p48_p2, %p47_p1 }
  0x2f   : > { %p38_p8 = scmp.eq.s32.totalorder %s35_s16, 0  ;;  %p659_p13 = por %p788_p12, %p47_p1 }
  0x30   : > { %s144_s24 = sand.u32 1, %s527_s11   ;;  %s313_s27 = sshll.u32 %s535_s13, 7 }
  0x31   : > { %s667_s28 = scalar_select %p38_p8, %s527_s11, %s40_s26  }
  0x32   : > { %s312_s23 = sshll.u32 %s144_s24, 3  ;;  %s673_s3 = scalar_lea.hbm %s773_s0, %s313_s27 }
  0x33   : > { %s148_s18 = scalar_lea.vmem [#allocation2], %s312_s23  ;;  %p677_p10 = pnand %p343_p6, %p49_p11 }
  0x34   : > { %s156_s4 = sshll.u32 %s148_s18, 4  ;;  %s145_s26 = scalar_lea.sflag [#allocation3], %s144_s24  ;;  %s675_s4 = int_to_ptr.vmem [resolvable:$true] %s156_s4 }
  0x35   : > { %s423_s6 = scalar_lea.hbm %s673_s3, 128  ;;  %p425_p3 = pneg %p677_p10 }
  0x36   : > { %p424_p0 = scmp.ne.s32.totalorder %s673_s3, %s423_s6  ;;  %s428_s15 = scalar_lea.hbm %s773_s0, 512 }
  0x37   : > { %p429_p9 = scmp.lt.u32.totalorder %s673_s3, %s773_s0  ;;  %p430_p4 = scmp.lt.u32.totalorder %s428_s15, %s423_s6 }
  0x38   : > { %p426_p5 = pnand %p425_p3, %p424_p0  ;;  %p432_p2 = scmp.lt.u32.totalorder %s423_s6, %s673_s3 }
  0x39   : > { %p431_p1 = por %p430_p4, %p429_p9 }
  0x3a   : > { %p427_p7 = pneg %p426_p5 }
  0x3b   : > { %p433_p6 = por %p432_p2, %p431_p1 }
  0x3d   : > { %p434_p8 = pnand %p433_p6, %p427_p7 }
  0x3f   : > { %437 = shalt.err (!%p434_p8)
}
  0x40   : > { %s438_s24 = scalar_lea.vmem %s675_s4, 128  ;;  %s542_s27 = smov [#allocation2]  }
  0x41   : > { %p439_p11 = scmp.ne.s32.totalorder %s675_s4, %s438_s24  ;;  %s443_s29 = sshll.u32 %s542_s27, 4  ;;  %s444_s29 = int_to_ptr.vmem [resolvable:$false] %s443_s29 }
  0x42   : > { %s445_s30 = scalar_lea.vmem %s444_s29, 256  ;;  %p446_p5 = scmp.lt.s32.totalorder %s675_s4, %s444_s29 }
  0x43   : > { %p441_p12 = pnand %p439_p11, %p425_p3  ;;  %p447_p9 = scmp.lt.s32.totalorder %s445_s30, %s438_s24 }
  0x45   : > { %p442_p0 = pneg %p441_p12  ;;  %p448_p4 = por %p447_p9, %p446_p5 }
  0x47   : > { %p449_p1 = pnand %p448_p4, %p442_p0 }
  0x49   : > { %452 = shalt.err (!%p449_p1)
}
  0x4a   : > { %337 = dma.hbm_to_vmem [thread:$0]  (!%p677_p10), %s673_s3, 128, %s675_s4, %s145_s26  }
  0x4b   : > { %p791_p7 = scmp.ne.s32.totalorder %s784_s21, 0 }
  0x4c   : > { %s709_s18 = sand.u32 (!%p791_p7), 1, %s523_s10   ;;  %p792_p3 = scmp.ne.s32.totalorder (!%p791_p7), %s782_s19, 0 }
  0x4d   : > { %165 = sbr.rel (%p791_p7) target bundleno = 113 (0x71), region = 28  ;;  %s315_s6 = sshll.u32 (!%p791_p7), %s709_s18, 3 }
  0x4e   : > { %s168_s7 = scalar_lea.sflag (!%p791_p7), [#allocation3], %s709_s18  ;;  %s171_s8 = scalar_lea.vmem (!%p791_p7), [#allocation2], %s315_s6 }
  0x54   : > { %506 = dma.done.wait (%p792_p3), %s168_s7, 128  }
  0x55   : > { %508 = vsyncadd (%p792_p3), %s168_s7, 4294967168  ;;  %p793_p2 = scmp.ne.s32.totalorder %s780_s17, 0 }
  0x57   : > { %510 = dma.done.wait (%p793_p2), [#allocation6], 128  }
  0x58   : > { %512 = vsyncadd (%p793_p2), [#allocation6], 4294967168  ;;  %s195_s21 = scalar_lea.vmem [#allocation7], %s315_s6  ;;  %s319_s4 = sshll.u32 %s531_s12, 7  ;;  %v196_v0 = vld [vmem:[#allocation5] sm:$0xff]  ;;  %v197_v1 = vld [vmem:[%s171_s8] sm:$0xff] }
  0x59   : > { %s215_s3 = sshll.u32 %s195_s21, 4  ;;  %v198_v2 = vadd.f32 %v197_v1, %v196_v0  ;;  %s727_s26 = scalar_lea.hbm %s775_s2, %s319_s4  ;;  %s722_s3 = int_to_ptr.vmem [resolvable:$true] %s215_s3 }
  0x5a   : > { %s201_s17 = scalar_lea.sflag [#allocation4], %s709_s18  ;;  %s453_s15 = scalar_lea.vmem %s722_s3, 128 }
  0x5b   : > { %199 = vst [vmem:[%s195_s21] sm:$0xff] %v198_v2  ;;  %p454_p10 = scmp.ne.s32.totalorder %s722_s3, %s453_s15  ;;  %s543_s12 = smov [#allocation7]  }
  0x5c   : > { %s457_s16 = sshll.u32 %s543_s12, 4  ;;  %s458_s16 = int_to_ptr.vmem [resolvable:$false] %s457_s16 }
  0x5d   : > { %p455_p6 = pnand %p454_p10, %p659_p13  ;;  %s459_s23 = scalar_lea.vmem %s458_s16, 256 }
  0x5e   : > { %p460_p11 = scmp.lt.s32.totalorder %s722_s3, %s458_s16  ;;  %p461_p12 = scmp.lt.s32.totalorder %s459_s23, %s453_s15 }
  0x5f   : > { %p456_p8 = pneg %p455_p6 }
  0x60   : > { %p462_p0 = por %p461_p12, %p460_p11 }
  0x62   : > { %p463_p5 = pnand %p462_p0, %p456_p8 }
  0x64   : > { %466 = shalt.err (!%p463_p5)
}
  0x65   : > { %s467_s24 = scalar_lea.hbm %s727_s26, 128  ;;  %s471_s30 = scalar_lea.hbm %s775_s2, 512 }
  0x66   : > { %p468_p9 = scmp.ne.s32.totalorder %s727_s26, %s467_s24  ;;  %p472_p7 = scmp.lt.u32.totalorder %s727_s26, %s775_s2 }
  0x67   : > { %p473_p3 = scmp.lt.u32.totalorder %s471_s30, %s467_s24  ;;  %p475_p10 = scmp.lt.u32.totalorder %s467_s24, %s727_s26 }
  0x68   : > { %p469_p4 = pnand %p468_p9, %p659_p13 }
  0x69   : > { %p474_p2 = por %p473_p3, %p472_p7 }
  0x6a   : > { %p470_p1 = pneg %p469_p4 }
  0x6b   : > { %p476_p6 = por %p475_p10, %p474_p2 }
  0x6d   : > { %p477_p8 = pnand %p476_p6, %p470_p1 }
  0x6f   : > { %480 = shalt.err (!%p477_p8)
}
  0x70   : > { %328 = dma.vmem_to_hbm [thread:$0]  (%p659_p13), %s722_s3, 128, %s727_s26, %s201_s17  }
  0x71 PF: > { %p345_p11 = scmp.ge.s32.totalorder %s539_s14, 2  ;;  %s227_s7 = sand.u32 1, %s519_s9  }
  0x72   : > { %p794_p12 = scmp.ne.s32.totalorder %s783_s20, 0  ;;  %s228_s8 = scalar_lea.sflag [#allocation4], %s227_s7 }
  0x74   : > { %p339_p0 = pnand %p345_p11, %p794_p12 }
  0x76   : > { %514 = dma.done.wait (!%p339_p0), %s228_s8, 128  }
  0x77   : > { %516 = vsyncadd (!%p339_p0), %s228_s8, 4294967168  ;;  %s19_s14 = sadd.s32 1, %s539_s14   ;;  %s795_s9 = smov %s523_s10 }
  0x78   : > { %p16_p5 = scmp.ge.s32.totalorder %s19_s14, 6   ;;  %s796_s10 = smov %s527_s11 }
  0x79   : > { %s797_s11 = smov %s667_s28  ;;  %s798_s12 = smov %s535_s13 }
  0x7a   : > { %s799_s13 = smov %s801_s25  ;;  %18 = sbr.rel (!%p16_p5) target bundleno = 7 (0x7), region = 78 }
  0x81   :  { %233 = vsyncpa [#allocation3], 1 }
  0x82   :  { %235 = vsyncpa [#allocation3 + $0x1], 1 }
  0x83   :  { %236 = vsyncpa [#allocation6], 1 }
  0x84   :  { %237 = vsyncpa [#allocation4], 1 }
  0x85   :  { %239 = vsyncpa [#allocation4 + $0x1], 1 }

</bundles_post_ra>
